<compile_context>
chip_gen: v7x
topology: tpu7x:2x2x1
jax: 0.10.0
libtpu: 0.0.40
codegen_flags: <defaults>
</compile_context>

<pallas_src>
import functools

import jax
import jax.numpy as jnp
from jax.experimental import pallas as pl
from jax.experimental.pallas import tpu as pltpu

EPS = 1e-5                        # PyTorch BatchNorm2d default eps
LANE = 128                        # TPU lane width
_VMEM_LIMIT = 48 * 1024 * 1024    # <= v7x physical (64 MiB); plenty on v5e/v6e


def _round_up(v, m):
    return (v + m - 1) // m * m


# --------------------------------------------------------------------------
# Pass A: gate / x_layer 1x1 convs + per-tile BN1/BN2 partial statistics
#   blocks: g (Fg, tp), x (Fl, tp)  ->  yg, yx (Fi, tp)
# --------------------------------------------------------------------------
def _proj_stats_kernel(g_ref, x_ref, wgT_ref, bg_ref, wxT_ref, bx_ref,
                       yg_ref, yx_ref, st_ref, *, hw_real, masked, mxu_dtype):
    tp = g_ref.shape[-1]
    gact = g_ref[0].astype(mxu_dtype)                       # (Fg, tp)
    xact = x_ref[0].astype(mxu_dtype)                       # (Fl, tp)

    yg = jnp.dot(wgT_ref[...], gact,
                 preferred_element_type=jnp.float32) + bg_ref[...]   # (Fi, tp)
    yx = jnp.dot(wxT_ref[...], xact,
                 preferred_element_type=jnp.float32) + bx_ref[...]   # (Fi, tp)
    yg_ref[0] = yg.astype(yg_ref.dtype)
    yx_ref[0] = yx.astype(yx_ref.dtype)

    if masked:
        lane = jax.lax.broadcasted_iota(jnp.int32, (1, tp), 1)
        m = (pl.program_id(1) * tp + lane < hw_real).astype(jnp.float32)
        ygm = yg * m
        yxm = yx * m
    else:
        ygm = yg
        yxm = yx
    # per-channel partial sums / sums of squares over this pixel tile
    st_ref[0, 0, :, 0:1] = jnp.sum(ygm, axis=1, keepdims=True)
    st_ref[0, 0, :, 1:2] = jnp.sum(ygm * yg, axis=1, keepdims=True)
    st_ref[0, 0, :, 2:3] = jnp.sum(yxm, axis=1, keepdims=True)
    st_ref[0, 0, :, 3:4] = jnp.sum(yxm * yx, axis=1, keepdims=True)


# --------------------------------------------------------------------------
# Pass B: pre = ReLU(BN1(yg) + BN2(yx));  yp = sum_c(wp_c * pre_c) + bp
#   psi is 1 real channel -> VPU multiply + sublane reduction, lane-dense (1, tp)
# --------------------------------------------------------------------------
def _psi_stats_kernel(yg_ref, yx_ref, s1_ref, s2_ref, b12_ref, wp_ref, bp_ref,
                      yp_ref, st_ref, *, hw_real, masked):
    tp = yg_ref.shape[-1]
    yg = yg_ref[0].astype(jnp.float32)                      # (Fi, tp)
    yx = yx_ref[0].astype(jnp.float32)
    pre = jnp.maximum(yg * s1_ref[...] + yx * s2_ref[...] + b12_ref[...], 0.0)
    yp = jnp.sum(pre * wp_ref[...], axis=0, keepdims=True) + bp_ref[...]   # (1, tp)
    yp_ref[0] = yp

    if masked:
        lane = jax.lax.broadcasted_iota(jnp.int32, (1, tp), 1)
        m = (pl.program_id(1) * tp + lane < hw_real).astype(jnp.float32)
        ypm = yp * m
    else:
        ypm = yp
    st_ref[0, 0, :, 0:1] = jnp.sum(ypm, axis=1, keepdims=True)
    st_ref[0, 0, :, 1:2] = jnp.sum(ypm * yp, axis=1, keepdims=True)


# --------------------------------------------------------------------------
# Pass C: out = x * sigmoid(BN3(yp))
# --------------------------------------------------------------------------
def _gate_apply_kernel(x_ref, yp_ref, s3_ref, b3_ref, o_ref):
    psi = jax.nn.sigmoid(yp_ref[0] * s3_ref[...] + b3_ref[...])    # (1, tp)
    o_ref[0] = (x_ref[0] * psi).astype(o_ref.dtype)                # sublane bcast


# --------------------------------------------------------------------------
# Wrapper
# --------------------------------------------------------------------------
def attention_block_pallas(g, x, params, *, tp=1024, compute_dtype=jnp.bfloat16):
    """Attention_block.forward.  g: (N,F_g,H,W), x: (N,F_l,H,W)."""
    (wg, bg, gam1, bet1,
     wx, bx, gam2, bet2,
     wp, bp, gam3, bet3) = params

    f32 = jnp.float32
    N, Fg, H, W = g.shape
    Nx, Fl, Hx, Wx_ = x.shape
    assert (N, H, W) == (Nx, Hx, Wx_)
    Fi = wg.shape[1]
    HW = H * W

    # ---- pixel-tile (lane) sizing -------------------------------------------
    dsz = jnp.dtype(compute_dtype).itemsize
    tp = max(LANE, _round_up(tp, LANE))
    # keep both v7x TensorCores busy when batch is 1
    if N == 1:
        tp = min(tp, max(LANE, _round_up(pl.cdiv(HW, 2), LANE)))
    # pass-A double-buffered working set per pixel: g,x in (f32) + yg,yx out
    per_pix = 2 * (4 * (Fg + Fl) + 2 * dsz * Fi)
    tp_cap = max(LANE, (int(0.75 * _VMEM_LIMIT) // max(per_pix, 1)) // LANE * LANE)
    tp = min(tp, tp_cap)
    tp = min(tp, _round_up(HW, LANE))
    HWp = _round_up(HW, tp)
    ntp = HWp // tp
    masked = (HWp != HW)

    # ---- layout: (N, C, HW) slabs, channels on sublanes, pixels on lanes -----
    def to3d(t):
        t3 = jnp.reshape(t.astype(f32), (N, t.shape[1], HW))
        if masked:
            t3 = jnp.pad(t3, ((0, 0), (0, 0), (0, HWp - HW)))
        return t3

    g3 = to3d(g)
    x3 = to3d(x)

    wgT = jnp.transpose(wg).astype(compute_dtype)     # (Fi, Fg)
    wxT = jnp.transpose(wx).astype(compute_dtype)     # (Fi, Fl)
    bg2 = jnp.reshape(bg.astype(f32), (Fi, 1))
    bx2 = jnp.reshape(bx.astype(f32), (Fi, 1))
    wp2 = jnp.reshape(wp.astype(f32), (Fi, 1))
    bp2 = jnp.reshape(bp.astype(f32), (1, 1))

    cparams = pltpu.CompilerParams(
        dimension_semantics=("parallel", "parallel"),
        vmem_limit_bytes=_VMEM_LIMIT)

    # ---------------- pass A ----------------
    yg, yx, statsA = pl.pallas_call(
        functools.partial(_proj_stats_kernel, hw_real=HW, masked=masked,
                          mxu_dtype=compute_dtype),
        out_shape=(
            jax.ShapeDtypeStruct((N, Fi, HWp), compute_dtype),
            jax.ShapeDtypeStruct((N, Fi, HWp), compute_dtype),
            jax.ShapeDtypeStruct((N, ntp, Fi, 4), f32),
        ),
        grid_spec=pltpu.PrefetchScalarGridSpec(
            num_scalar_prefetch=0,
            grid=(N, ntp),
            in_specs=[
                pl.BlockSpec((1, Fg, tp), lambda n, i: (n, 0, i)),
                pl.BlockSpec((1, Fl, tp), lambda n, i: (n, 0, i)),
                pl.BlockSpec((Fi, Fg), lambda n, i: (0, 0)),
                pl.BlockSpec((Fi, 1), lambda n, i: (0, 0)),
                pl.BlockSpec((Fi, Fl), lambda n, i: (0, 0)),
                pl.BlockSpec((Fi, 1), lambda n, i: (0, 0)),
            ],
            out_specs=(
                pl.BlockSpec((1, Fi, tp), lambda n, i: (n, 0, i)),
                pl.BlockSpec((1, Fi, tp), lambda n, i: (n, 0, i)),
                pl.BlockSpec((1, 1, Fi, 4), lambda n, i: (n, i, 0, 0)),
            ),
        ),
        compiler_params=cparams,
    )(g3, x3, wgT, bg2, wxT, bx2)

    # tiny XLA reduction: global BN1/BN2 stats -> per-channel scale & shift
    cnt = jnp.float32(N * HW)
    tot = jnp.sum(statsA, axis=(0, 1))                      # (Fi, 4)

    def bn_affine(s, ss, gamma, beta):
        mean = s / cnt
        var = jnp.maximum(ss / cnt - mean * mean, 0.0)      # biased, training-mode BN
        scale = gamma.astype(f32) * jax.lax.rsqrt(var + EPS)
        return scale, beta.astype(f32) - mean * scale

    s1, b1 = bn_affine(tot[:, 0], tot[:, 1], gam1, bet1)
    s2, b2 = bn_affine(tot[:, 2], tot[:, 3], gam2, bet2)
    s1c = jnp.reshape(s1, (Fi, 1))
    s2c = jnp.reshape(s2, (Fi, 1))
    b12 = jnp.reshape(b1 + b2, (Fi, 1))        # fold both BN shifts into one add

    # ---------------- pass B ----------------
    yp, statsB = pl.pallas_call(
        functools.partial(_psi_stats_kernel, hw_real=HW, masked=masked),
        out_shape=(
            jax.ShapeDtypeStruct((N, 1, HWp), f32),
            jax.ShapeDtypeStruct((N, ntp, 1, 2), f32),
        ),
        grid_spec=pltpu.PrefetchScalarGridSpec(
            num_scalar_prefetch=0,
            grid=(N, ntp),
            in_specs=[
                pl.BlockSpec((1, Fi, tp), lambda n, i: (n, 0, i)),
                pl.BlockSpec((1, Fi, tp), lambda n, i: (n, 0, i)),
                pl.BlockSpec((Fi, 1), lambda n, i: (0, 0)),
                pl.BlockSpec((Fi, 1), lambda n, i: (0, 0)),
                pl.BlockSpec((Fi, 1), lambda n, i: (0, 0)),
                pl.BlockSpec((Fi, 1), lambda n, i: (0, 0)),
                pl.BlockSpec((1, 1), lambda n, i: (0, 0)),
            ],
            out_specs=(
                pl.BlockSpec((1, 1, tp), lambda n, i: (n, 0, i)),
                pl.BlockSpec((1, 1, 1, 2), lambda n, i: (n, i, 0, 0)),
            ),
        ),
        compiler_params=cparams,
    )(yg, yx, s1c, s2c, b12, wp2, bp2)

    totB = jnp.sum(statsB, axis=(0, 1))                     # (1, 2)
    mean3 = totB[0, 0] / cnt
    var3 = jnp.maximum(totB[0, 1] / cnt - mean3 * mean3, 0.0)
    scale3 = gam3.astype(f32)[0] * jax.lax.rsqrt(var3 + EPS)
    shift3 = bet3.astype(f32)[0] - mean3 * scale3
    s3 = jnp.reshape(scale3, (1, 1))
    b3 = jnp.reshape(shift3, (1, 1))

    # ---------------- pass C ----------------
    out3 = pl.pallas_call(
        _gate_apply_kernel,
        out_shape=jax.ShapeDtypeStruct((N, Fl, HWp), f32),
        grid_spec=pltpu.PrefetchScalarGridSpec(
            num_scalar_prefetch=0,
            grid=(N, ntp),
            in_specs=[
                pl.BlockSpec((1, Fl, tp), lambda n, i: (n, 0, i)),
                pl.BlockSpec((1, 1, tp), lambda n, i: (n, 0, i)),
                pl.BlockSpec((1, 1), lambda n, i: (0, 0)),
                pl.BlockSpec((1, 1), lambda n, i: (0, 0)),
            ],
            out_specs=pl.BlockSpec((1, Fl, tp), lambda n, i: (n, 0, i)),
        ),
        compiler_params=cparams,
    )(x3, yp, s3, b3)

    out = out3[:, :, :HW] if masked else out3
    return jnp.reshape(out, (N, Fl, H, W)).astype(x.dtype)


# --------------------------------------------------------------------------
# Pure-JAX reference with identical semantics (training-mode BatchNorm)
# --------------------------------------------------------------------------
def attention_block_reference(g, x, params):
    (wg, bg, gam1, bet1,
     wx, bx, gam2, bet2,
     wp, bp, gam3, bet3) = params

    def conv1x1(t, w, b):
        y = jnp.einsum('nchw,cd->ndhw', t.astype(jnp.float32), w.astype(jnp.float32),
                       precision=jax.lax.Precision.HIGHEST)
        return y + b.astype(jnp.float32)[None, :, None, None]

    def bn(y, gamma, beta):
        m = jnp.mean(y, axis=(0, 2, 3), keepdims=True)
        v = jnp.mean(jnp.square(y - m), axis=(0, 2, 3), keepdims=True)
        yhat = (y - m) * jax.lax.rsqrt(v + EPS)
        return yhat * gamma[None, :, None, None] + beta[None, :, None, None]

    yg = bn(conv1x1(g, wg, bg), gam1, bet1)
    yx = bn(conv1x1(x, wx, bx), gam2, bet2)
    pre = jnp.maximum(yg + yx, 0.0)
    ypsi = bn(conv1x1(pre, wp, bp), gam3, bet3)
    psi = jax.nn.sigmoid(ypsi)
    return x * psi


if __name__ == "__main__":
    key = jax.random.PRNGKey(0)

    def make_params(k, Fg, Fl, Fi):
        ks = jax.random.split(k, 12)
        wg = 0.3 * jax.random.normal(ks[0], (Fg, Fi), jnp.float32)
        bg = 0.1 * jax.random.normal(ks[1], (Fi,), jnp.float32)
        gam1 = 1.0 + 0.1 * jax.random.normal(ks[2], (Fi,), jnp.float32)
        bet1 = 0.1 * jax.random.normal(ks[3], (Fi,), jnp.float32)
        wx = 0.3 * jax.random.normal(ks[4], (Fl, Fi), jnp.float32)
        bx = 0.1 * jax.random.normal(ks[5], (Fi,), jnp.float32)
        gam2 = 1.0 + 0.1 * jax.random.normal(ks[6], (Fi,), jnp.float32)
        bet2 = 0.1 * jax.random.normal(ks[7], (Fi,), jnp.float32)
        wp = 0.3 * jax.random.normal(ks[8], (Fi, 1), jnp.float32)
        bp = 0.1 * jax.random.normal(ks[9], (1,), jnp.float32)
        gam3 = 1.0 + 0.1 * jax.random.normal(ks[10], (1,), jnp.float32)
        bet3 = 0.1 * jax.random.normal(ks[11], (1,), jnp.float32)
        return (wg, bg, gam1, bet1, wx, bx, gam2, bet2, wp, bp, gam3, bet3)

    cases = [
        dict(N=2, Fg=8, Fl=8, Fi=4, H=16, W=16),   # HW=256: no pixel padding needed
        dict(N=2, Fg=8, Fl=8, Fi=4, H=10, W=10),   # HW=100: padded lanes + mask path
    ]
    for ci, c in enumerate(cases):
        kg, kx, kp, key = jax.random.split(key, 4)
        g = jax.random.normal(kg, (c["N"], c["Fg"], c["H"], c["W"]), jnp.float32)
        x = jax.random.normal(kx, (c["N"], c["Fl"], c["H"], c["W"]), jnp.float32)
        params = make_params(kp, c["Fg"], c["Fl"], c["Fi"])
        ref = jax.block_until_ready(attention_block_reference(g, x, params))

        # f32 run proves the kernel math exactly; bf16 run is the perf path
        # (looser tolerance only reflects bf16 storage/MXU-input quantization).
        runs = [(jnp.float32, 2e-3)] if ci == 0 else []
        runs.append((jnp.bfloat16, 5e-2))
        for dt, tol in runs:
            out = jax.block_until_ready(
                attention_block_pallas(g, x, params, tp=1024, compute_dtype=dt))
            assert out.shape == x.shape, (out.shape, x.shape)
            if not jnp.allclose(out, ref, rtol=tol, atol=tol):
                max_err = float(jnp.max(jnp.abs(out - ref)))
                raise AssertionError(
                    f"case {ci} dtype={jnp.dtype(dt).name}: max_abs_err={max_err}")

    print("KERNEL_OK")
</pallas_src>

<mosaic_0001>
module attributes {stable_mosaic.version = 11 : i64} {
  func.func @_proj_stats_kernel(%arg0: i32, %arg1: i32, %arg2: memref<1x8x256xf32, #tpu.memory_space<vmem>>, %arg3: memref<1x8x256xf32, #tpu.memory_space<vmem>>, %arg4: memref<4x8xf32, #tpu.memory_space<vmem>>, %arg5: memref<4x1xf32, #tpu.memory_space<vmem>>, %arg6: memref<4x8xf32, #tpu.memory_space<vmem>>, %arg7: memref<4x1xf32, #tpu.memory_space<vmem>>, %arg8: memref<1x4x256xf32, #tpu.memory_space<vmem>>, %arg9: memref<1x4x256xf32, #tpu.memory_space<vmem>>, %arg10: memref<1x1x4x4xf32, #tpu.memory_space<vmem>>) attributes {dimension_semantics = [#tpu.dimension_semantics<parallel>, #tpu.dimension_semantics<parallel>], iteration_bounds = array<i64: 2, 1>, scalar_prefetch = 0 : i64, scratch_operands = 0 : i64, tpu.core_type = #tpu.core_type<tc>, window_params = [{transform_indices = @transform_0, window_bounds = array<i64: 1, 8, 256>}, {transform_indices = @transform_1, window_bounds = array<i64: 1, 8, 256>}, {pipeline_mode = #tpu.pipeline_mode<synchronous>, transform_indices = @transform_2, window_bounds = array<i64: 4, 8>}, {pipeline_mode = #tpu.pipeline_mode<synchronous>, transform_indices = @transform_3, window_bounds = array<i64: 4, 1>}, {pipeline_mode = #tpu.pipeline_mode<synchronous>, transform_indices = @transform_4, window_bounds = array<i64: 4, 8>}, {pipeline_mode = #tpu.pipeline_mode<synchronous>, transform_indices = @transform_5, window_bounds = array<i64: 4, 1>}, {transform_indices = @transform_6, window_bounds = array<i64: 1, 4, 256>}, {transform_indices = @transform_7, window_bounds = array<i64: 1, 4, 256>}, {transform_indices = @transform_8, window_bounds = array<i64: 1, 1, 4, 4>}]} {
    %c0 = arith.constant 0 : index
    %c0_0 = arith.constant 0 : index
    %c0_1 = arith.constant 0 : index
    %0 = vector.load %arg2[%c0, %c0_0, %c0_1] : memref<1x8x256xf32, #tpu.memory_space<vmem>>, vector<1x8x256xf32>
    %1 = vector.shape_cast %0 : vector<1x8x256xf32> to vector<8x256xf32>
    %c0_2 = arith.constant 0 : index
    %c0_3 = arith.constant 0 : index
    %c0_4 = arith.constant 0 : index
    %2 = vector.load %arg3[%c0_2, %c0_3, %c0_4] : memref<1x8x256xf32, #tpu.memory_space<vmem>>, vector<1x8x256xf32>
    %3 = vector.shape_cast %2 : vector<1x8x256xf32> to vector<8x256xf32>
    %c0_5 = arith.constant 0 : index
    %c0_6 = arith.constant 0 : index
    %4 = vector.load %arg4[%c0_5, %c0_6] : memref<4x8xf32, #tpu.memory_space<vmem>>, vector<4x8xf32>
    %cst = arith.constant dense<0.000000e+00> : vector<4x256xf32>
    %5 = tpu.matmul %4, %1, %cst {dimension_numbers = #tpu.dot_dimension_numbers<[1], [0], [0], [1], [0, 0, 1, 1], [], []>} : vector<4x8xf32>, vector<8x256xf32>, vector<4x256xf32> -> vector<4x256xf32>
    %c0_7 = arith.constant 0 : index
    %c0_8 = arith.constant 0 : index
    %6 = vector.load %arg5[%c0_7, %c0_8] : memref<4x1xf32, #tpu.memory_space<vmem>>, vector<4x1xf32>
    %7 = vector.broadcast %6 : vector<4x1xf32> to vector<4x256xf32>
    %8 = arith.addf %5, %7 : vector<4x256xf32>
    %c0_9 = arith.constant 0 : index
    %c0_10 = arith.constant 0 : index
    %9 = vector.load %arg6[%c0_9, %c0_10] : memref<4x8xf32, #tpu.memory_space<vmem>>, vector<4x8xf32>
    %cst_11 = arith.constant dense<0.000000e+00> : vector<4x256xf32>
    %10 = tpu.matmul %9, %3, %cst_11 {dimension_numbers = #tpu.dot_dimension_numbers<[1], [0], [0], [1], [0, 0, 1, 1], [], []>} : vector<4x8xf32>, vector<8x256xf32>, vector<4x256xf32> -> vector<4x256xf32>
    %c0_12 = arith.constant 0 : index
    %c0_13 = arith.constant 0 : index
    %11 = vector.load %arg7[%c0_12, %c0_13] : memref<4x1xf32, #tpu.memory_space<vmem>>, vector<4x1xf32>
    %12 = vector.broadcast %11 : vector<4x1xf32> to vector<4x256xf32>
    %13 = arith.addf %10, %12 : vector<4x256xf32>
    %c0_14 = arith.constant 0 : index
    %c0_15 = arith.constant 0 : index
    %c0_16 = arith.constant 0 : index
    %14 = vector.load %arg8[%c0_14, %c0_15, %c0_16] : memref<1x4x256xf32, #tpu.memory_space<vmem>>, vector<1x4x256xf32>
    %15 = vector.shape_cast %14 : vector<1x4x256xf32> to vector<4x256xf32>
    %16 = vector.shape_cast %8 : vector<4x256xf32> to vector<1x4x256xf32>
    tpu.vector_store %arg8[%c0_14, %c0_15, %c0_16], %16 {strides = array<i32>} : memref<1x4x256xf32, #tpu.memory_space<vmem>>, vector<1x4x256xf32>,
    %c0_17 = arith.constant 0 : index
    %c0_18 = arith.constant 0 : index
    %c0_19 = arith.constant 0 : index
    %17 = vector.load %arg9[%c0_17, %c0_18, %c0_19] : memref<1x4x256xf32, #tpu.memory_space<vmem>>, vector<1x4x256xf32>
    %18 = vector.shape_cast %17 : vector<1x4x256xf32> to vector<4x256xf32>
    %19 = vector.shape_cast %13 : vector<4x256xf32> to vector<1x4x256xf32>
    tpu.vector_store %arg9[%c0_17, %c0_18, %c0_19], %19 {strides = array<i32>} : memref<1x4x256xf32, #tpu.memory_space<vmem>>, vector<1x4x256xf32>,
    %cst_20 = arith.constant dense<0.000000e+00> : vector<4xf32>
    %20 = vector.multi_reduction <add>, %8, %cst_20 [1] : vector<4x256xf32> to vector<4xf32>
    %21 = vector.shape_cast %20 : vector<4xf32> to vector<4x1xf32>
    %c0_21 = arith.constant 0 : index
    %c0_22 = arith.constant 0 : index
    %c0_23 = arith.constant 0 : index
    %c0_24 = arith.constant 0 : index
    %22 = vector.load %arg10[%c0_21, %c0_22, %c0_23, %c0_24] : memref<1x1x4x4xf32, #tpu.memory_space<vmem>>, vector<1x1x4x1xf32>
    %23 = vector.shape_cast %22 : vector<1x1x4x1xf32> to vector<4x1xf32>
    %24 = vector.shape_cast %21 : vector<4x1xf32> to vector<1x1x4x1xf32>
    tpu.vector_store %arg10[%c0_21, %c0_22, %c0_23, %c0_24], %24 {strides = array<i32>} : memref<1x1x4x4xf32, #tpu.memory_space<vmem>>, vector<1x1x4x1xf32>,
    %25 = arith.mulf %8, %8 : vector<4x256xf32>
    %cst_25 = arith.constant dense<0.000000e+00> : vector<4xf32>
    %26 = vector.multi_reduction <add>, %25, %cst_25 [1] : vector<4x256xf32> to vector<4xf32>
    %27 = vector.shape_cast %26 : vector<4xf32> to vector<4x1xf32>
    %c0_26 = arith.constant 0 : index
    %c0_27 = arith.constant 0 : index
    %c0_28 = arith.constant 0 : index
    %c1 = arith.constant 1 : index
    %28 = vector.load %arg10[%c0_26, %c0_27, %c0_28, %c1] : memref<1x1x4x4xf32, #tpu.memory_space<vmem>>, vector<1x1x4x1xf32>
    %29 = vector.shape_cast %28 : vector<1x1x4x1xf32> to vector<4x1xf32>
    %30 = vector.shape_cast %27 : vector<4x1xf32> to vector<1x1x4x1xf32>
    tpu.vector_store %arg10[%c0_26, %c0_27, %c0_28, %c1], %30 {strides = array<i32>} : memref<1x1x4x4xf32, #tpu.memory_space<vmem>>, vector<1x1x4x1xf32>,
    %cst_29 = arith.constant dense<0.000000e+00> : vector<4xf32>
    %31 = vector.multi_reduction <add>, %13, %cst_29 [1] : vector<4x256xf32> to vector<4xf32>
    %32 = vector.shape_cast %31 : vector<4xf32> to vector<4x1xf32>
    %c0_30 = arith.constant 0 : index
    %c0_31 = arith.constant 0 : index
    %c0_32 = arith.constant 0 : index
    %c2 = arith.constant 2 : index
    %33 = vector.load %arg10[%c0_30, %c0_31, %c0_32, %c2] : memref<1x1x4x4xf32, #tpu.memory_space<vmem>>, vector<1x1x4x1xf32>
    %34 = vector.shape_cast %33 : vector<1x1x4x1xf32> to vector<4x1xf32>
    %35 = vector.shape_cast %32 : vector<4x1xf32> to vector<1x1x4x1xf32>
    tpu.vector_store %arg10[%c0_30, %c0_31, %c0_32, %c2], %35 {strides = array<i32>} : memref<1x1x4x4xf32, #tpu.memory_space<vmem>>, vector<1x1x4x1xf32>,
    %36 = arith.mulf %13, %13 : vector<4x256xf32>
    %cst_33 = arith.constant dense<0.000000e+00> : vector<4xf32>
    %37 = vector.multi_reduction <add>, %36, %cst_33 [1] : vector<4x256xf32> to vector<4xf32>
    %38 = vector.shape_cast %37 : vector<4xf32> to vector<4x1xf32>
    %c0_34 = arith.constant 0 : index
    %c0_35 = arith.constant 0 : index
    %c0_36 = arith.constant 0 : index
    %c3 = arith.constant 3 : index
    %39 = vector.load %arg10[%c0_34, %c0_35, %c0_36, %c3] : memref<1x1x4x4xf32, #tpu.memory_space<vmem>>, vector<1x1x4x1xf32>
    %40 = vector.shape_cast %39 : vector<1x1x4x1xf32> to vector<4x1xf32>
    %41 = vector.shape_cast %38 : vector<4x1xf32> to vector<1x1x4x1xf32>
    tpu.vector_store %arg10[%c0_34, %c0_35, %c0_36, %c3], %41 {strides = array<i32>} : memref<1x1x4x4xf32, #tpu.memory_space<vmem>>, vector<1x1x4x1xf32>,
    return
  }
  func.func @transform_0(%arg0: i32, %arg1: i32) -> (i32, i32, i32) {
    %c0_i32 = arith.constant 0 : i32
    %c0_i32_0 = arith.constant 0 : i32
    return %arg0, %c0_i32, %arg1 : i32, i32, i32
  }
  func.func @transform_1(%arg0: i32, %arg1: i32) -> (i32, i32, i32) {
    %c0_i32 = arith.constant 0 : i32
    %c0_i32_0 = arith.constant 0 : i32
    return %arg0, %c0_i32, %arg1 : i32, i32, i32
  }
  func.func @transform_2(%arg0: i32, %arg1: i32) -> (i32, i32) {
    %c0_i32 = arith.constant 0 : i32
    %c0_i32_0 = arith.constant 0 : i32
    %c0_i32_1 = arith.constant 0 : i32
    return %c0_i32, %c0_i32_0 : i32, i32
  }
  func.func @transform_3(%arg0: i32, %arg1: i32) -> (i32, i32) {
    %c0_i32 = arith.constant 0 : i32
    %c0_i32_0 = arith.constant 0 : i32
    %c0_i32_1 = arith.constant 0 : i32
    return %c0_i32, %c0_i32_0 : i32, i32
  }
  func.func @transform_4(%arg0: i32, %arg1: i32) -> (i32, i32) {
    %c0_i32 = arith.constant 0 : i32
    %c0_i32_0 = arith.constant 0 : i32
    %c0_i32_1 = arith.constant 0 : i32
    return %c0_i32, %c0_i32_0 : i32, i32
  }
  func.func @transform_5(%arg0: i32, %arg1: i32) -> (i32, i32) {
    %c0_i32 = arith.constant 0 : i32
    %c0_i32_0 = arith.constant 0 : i32
    %c0_i32_1 = arith.constant 0 : i32
    return %c0_i32, %c0_i32_0 : i32, i32
  }
  func.func @transform_6(%arg0: i32, %arg1: i32) -> (i32, i32, i32) {
    %c0_i32 = arith.constant 0 : i32
    %c0_i32_0 = arith.constant 0 : i32
    return %arg0, %c0_i32, %arg1 : i32, i32, i32
  }
  func.func @transform_7(%arg0: i32, %arg1: i32) -> (i32, i32, i32) {
    %c0_i32 = arith.constant 0 : i32
    %c0_i32_0 = arith.constant 0 : i32
    return %arg0, %c0_i32, %arg1 : i32, i32, i32
  }
  func.func @transform_8(%arg0: i32, %arg1: i32) -> (i32, i32, i32, i32) {
    %c0_i32 = arith.constant 0 : i32
    %c0_i32_0 = arith.constant 0 : i32
    %c0_i32_1 = arith.constant 0 : i32
    return %arg0, %arg1, %c0_i32, %c0_i32_0 : i32, i32, i32, i32
  }
}

</mosaic_0001>

<bundles_post_ra>
// kernel: tpu_custom_call.1
= control target key start
LH: loop header
LB: loop body
LE: loop exit
PB: predicated region body
PF: predicated region fallthrough
CT: control target
= control target key end

     0   :  { %s1532_s0 = inlined_call_operand.hbm [shape: f32[2,8,256], index: 0, kind: input, shape index: {}]   ;;  %s1533_s1 = inlined_call_operand.hbm [shape: f32[2,8,256], index: 1, kind: input, shape index: {}]   ;;  %s1534_s2 = inlined_call_operand.vmem [shape: f32[4,8], index: 2, kind: input, shape index: {}]   ;;  %s1535_s3 = inlined_call_operand.vmem [shape: f32[4,1], index: 3, kind: input, shape index: {}]   ;;  %s1536_s4 = inlined_call_operand.vmem [shape: f32[4,8], index: 4, kind: input, shape index: {}]   ;;  %s1537_s5 = inlined_call_operand.vmem [shape: f32[4,1], index: 5, kind: input, shape index: {}]   ;;  %s1538_s6 = inlined_call_operand.hbm [shape: f32[2,4,256], index: 6, kind: output, shape index: {0}]   ;;  %s1539_s7 = inlined_call_operand.hbm [shape: f32[2,4,256], index: 7, kind: output, shape index: {1}]   ;;  %s1540_s8 = inlined_call_operand.hbm [shape: f32[2,1,4,4], index: 8, kind: output, shape index: {2}]  }
   0x1   :  { %1548 = sst [smem:[#allocation18_spill]] %s1532_s0 }
   0x2   :  { %14 = vsyncpa [#allocation3], 0 }
   0x3   :  { %16 = vsyncpa [#allocation3 + $0x1], 0 }
   0x4   :  { %17 = vsyncpa [#allocation6], 0 }
   0x5   :  { %19 = vsyncpa [#allocation6 + $0x1], 0 }
   0x6   :  { %20 = vsyncpa [#allocation4], 0 }
   0x7   :  { %22 = vsyncpa [#allocation4 + $0x1], 0 }
   0x8   :  { %23 = vsyncpa [#allocation9], 0 }
   0x9   :  { %25 = vsyncpa [#allocation9 + $0x1], 0  ;;  %s1222_s27 = smov 0   ;;  %s1224_s28 = smov 0  }
   0xa   :  { %s1226_s29 = smov 0   ;;  %s1228_s30 = smov 0  }
   0xb   :  { %s1230_s9 = smov 0   ;;  %s1232_s10 = smov 0  }
   0xc LB: > { %1549 = sst [smem:[#allocation15_spill]] %s1164_s9  ;;  %s1253_s11 = sadd.s32 4294967295, %s1168_s10   ;;  %s1168_s10 = sphi %s1232_s10, %s31_s10   ;;  %s1164_s9 = sphi %s1230_s9, %s1571_s9   ;;  %s1160_s30 = sphi %s1228_s30, %s1570_s30   ;;  %s1156_s29 = sphi %s1226_s29, %s1574_s29   ;;  %s1152_s28 = sphi %s1224_s28, %s1573_s28   ;;  %s1148_s27 = sphi %s1222_s27, %s1572_s27  }
   0xd   : > { %s1541_s12 = sadd.s32 4294967294, %s1168_s10   ;;  %s43_s13 = sadd.s32 1, %s1164_s9 }
   0xe   : > { %s52_s14 = sadd.s32 1, %s1156_s29  ;;  %p45_p0 = scmp.ge.s32.totalorder %s43_s13, 2 }
   0xf   : > { %p59_p1 = scmp.ne.s32.totalorder %s1156_s29, %s1152_s28  ;;  %p60_p2 = scmp.eq.s32.totalorder %s1168_s10, 0 }
  0x10   : > { %p65_p3 = scmp.ne.s32.totalorder %s1152_s28, %s1148_s27  ;;  %s1576_s13 = smov (%p45_p0, %s43_s13), 0 }
  0x11   : > { %1550 = sst [smem:[#allocation16_spill]] %s1576_s13  ;;  %p1265_p4 = por %p60_p2, %p59_p1 }
  0x12   : > { %p66_p5 = scmp.eq.s32.totalorder %s1253_s11, 0  ;;  %s47_s16 = ssub.s32 %s1164_s9, %s1576_s13 }
  0x13   : > { %p203_p6 = scmp.eq.s32.totalorder %s1253_s11, 1  ;;  %p50_p7 = scmp.eq.s32.totalorder %s47_s16, 0 }
  0x14   : > { %p1273_p8 = por %p66_p5, %p65_p3  ;;  %p209_p10 = scmp.eq.s32.totalorder %s1541_s12, 1 }
  0x15   : > { %p1277_p9 = por %p203_p6, %p59_p1  ;;  %p909_p13 = scmp.lt.s32.totalorder %s1168_s10, 2 }
  0x16   : > { %s1552_s17 = scalar_select %p1273_p8, 1, 0 }
  0x17   : > { %s1553_s18 = scalar_select %p1277_p9, 1, 0 }
  0x18   : > { %s1284_s19 = scalar_select %p50_p7, %s1156_s29, %s52_s14  }
  0x19   : > { %p1286_p11 = por %p209_p10, %p65_p3  ;;  %s1293_s21 = sand.u32 1, %s1156_s29  }
  0x1a   : > { %1554 = sst [smem:[#allocation17_spill]] %s1284_s19  ;;  %s1542_s22 = sshll.u32 %s1293_s21, 4 }
  0x1b   : > { %s1555_s20 = scalar_select %p1286_p11, 1, 0 }
  0x1c   : > { %s1543_s23 = sshll.u32 %s1164_s9, 8  ;;  %s1556_s0 = sld [smem:[#allocation18_spill]] }
  0x1d   : > { %s301_s14 = scalar_lea.vmem [#allocation2], %s1542_s22  ;;  %p1310_p0 = pnand %p909_p13, %p1265_p4 }
  0x1e   : > { %s311_s16 = sshll.u32 %s301_s14, 4  ;;  %s298_s24 = scalar_lea.sflag [#allocation3], %s1293_s21  ;;  %s1306_s16 = int_to_ptr.vmem [resolvable:$true] %s311_s16 }
  0x1f   : > { %p964_p5 = pneg %p1310_p0 }
  0x22   : > { %s1302_s26 = scalar_lea.hbm %s1556_s0, %s1543_s23  ;;  %s967_s15 = scalar_lea.hbm %s1556_s0, 512 }
  0x23   : > { %s962_s25 = scalar_lea.hbm %s1302_s26, 256  ;;  %p968_p4 = scmp.lt.u32.totalorder %s1302_s26, %s1556_s0 }
  0x24   : > { %p963_p3 = scmp.ne.s32.totalorder %s1302_s26, %s962_s25  ;;  %p969_p10 = scmp.lt.u32.totalorder %s967_s15, %s962_s25 }
  0x25   : > { %p971_p12 = scmp.lt.u32.totalorder %s962_s25, %s1302_s26 }
  0x26   : > { %p965_p6 = pnand %p964_p5, %p963_p3  ;;  %p970_p13 = por %p969_p10, %p968_p4 }
  0x28   : > { %p966_p7 = pneg %p965_p6  ;;  %p972_p1 = por %p971_p12, %p970_p13 }
  0x2a   : > { %p973_p2 = pnand %p972_p1, %p966_p7 }
  0x2c   : > { %976 = shalt.err (!%p973_p2)
}
  0x2d   : > { %s977_s19 = scalar_lea.vmem %s1306_s16, 256  ;;  %s1170_s22 = smov [#allocation2]  }
  0x2e   : > { %p978_p3 = scmp.ne.s32.totalorder %s1306_s16, %s977_s19  ;;  %s982_s14 = sshll.u32 %s1170_s22, 4  ;;  %s983_s14 = int_to_ptr.vmem [resolvable:$false] %s982_s14 }
  0x2f   : > { %s984_s13 = scalar_lea.vmem %s983_s14, 512  ;;  %p985_p9 = scmp.lt.s32.totalorder %s1306_s16, %s983_s14 }
  0x30   : > { %p980_p6 = pnand %p978_p3, %p964_p5  ;;  %p986_p4 = scmp.lt.s32.totalorder %s984_s13, %s977_s19 }
  0x32   : > { %p981_p11 = pneg %p980_p6  ;;  %p987_p10 = por %p986_p4, %p985_p9 }
  0x34   : > { %p988_p12 = pnand %p987_p10, %p981_p11 }
  0x36   : > { %991 = shalt.err (!%p988_p12)
}
  0x37   : > { %895 = dma.hbm_to_vmem [thread:$0]  (!%p1310_p0), %s1302_s26, 256, %s1306_s16, %s298_s24  }
  0x38   : > { %p1558_p1 = scmp.lt.s32.totalorder %s1168_s10, 3  ;;  %p1559_p2 = scmp.ge.s32.totalorder %s1168_s10, 1 }
  0x39   : > { %s1561_s19 = sshll.u32 %s1164_s9, 8  ;;  %s1562_s14 = sshll.u32 %s1293_s21, 4 }
  0x3a   : > { %p1346_p7 = pnand %p1559_p2, %p1558_p1  ;;  %s1355_s22 = scalar_lea.hbm %s1533_s1, %s1561_s19 }
  0x3b   : > { %s322_s13 = scalar_lea.vmem [#allocation5], %s1562_s14  ;;  %s319_s26 = scalar_lea.sflag [#allocation6], %s1293_s21 }
  0x3c   : > { %s1560_s23 = scalar_select %p1346_p7, 1, 0 }
  0x3d   : > { %s332_s0 = sshll.u32 %s322_s13, 4  ;;  %s992_s16 = scalar_lea.hbm %s1355_s22, 256  ;;  %s333_s0 = int_to_ptr.vmem [resolvable:$true] %s332_s0 }
  0x3e   : > { %p993_p9 = scmp.ne.s32.totalorder %s1355_s22, %s992_s16  ;;  %s997_s19 = scalar_lea.hbm %s1533_s1, 512 }
  0x3f   : > { %p998_p3 = scmp.lt.u32.totalorder %s1355_s22, %s1533_s1  ;;  %p999_p6 = scmp.lt.u32.totalorder %s997_s19, %s992_s16 }
  0x40   : > { %p995_p11 = pnand %p993_p9, %p964_p5  ;;  %p1001_p10 = scmp.lt.u32.totalorder %s992_s16, %s1355_s22 }
  0x41   : > { %p1000_p4 = por %p999_p6, %p998_p3 }
  0x42   : > { %p996_p13 = pneg %p995_p11 }
  0x43   : > { %p1002_p12 = por %p1001_p10, %p1000_p4 }
  0x45   : > { %p1003_p1 = pnand %p1002_p12, %p996_p13 }
  0x47   : > { %1006 = shalt.err (!%p1003_p1)
}
  0x48   : > { %s1007_s21 = scalar_lea.vmem %s333_s0, 256  ;;  %s1171_s14 = smov [#allocation5]  }
  0x49   : > { %p1008_p2 = scmp.ne.s32.totalorder %s333_s0, %s1007_s21  ;;  %s1012_s9 = sshll.u32 %s1171_s14, 4  ;;  %s1013_s9 = int_to_ptr.vmem [resolvable:$false] %s1012_s9 }
  0x4a   : > { %s1014_s13 = scalar_lea.vmem %s1013_s9, 512  ;;  %p1015_p8 = scmp.lt.s32.totalorder %s333_s0, %s1013_s9 }
  0x4b   : > { %p1010_p9 = pnand %p1008_p2, %p964_p5  ;;  %p1016_p7 = scmp.lt.s32.totalorder %s1014_s13, %s1007_s21 }
  0x4d   : > { %p1011_p11 = pneg %p1010_p9  ;;  %p1017_p3 = por %p1016_p7, %p1015_p8 }
  0x4f   : > { %p1018_p6 = pnand %p1017_p3, %p1011_p11 }
  0x51   : > { %1021 = shalt.err (!%p1018_p6)
}
  0x52   : > { %898 = dma.hbm_to_vmem [thread:$0]  (!%p1310_p0), %s1355_s22, 256, %s333_s0, %s319_s26  }
  0x53   : > { %p1563_p13 = scmp.ne.s32.totalorder %s1560_s23, 0 }
  0x54   : > { %s1382_s16 = sand.u32 (!%p1563_p13), 1, %s1152_s28   ;;  %p1564_p5 = scmp.ne.s32.totalorder (!%p1563_p13), %s1552_s17, 0 }
  0x55   : > { %341 = sbr.rel (%p1563_p13) target bundleno = 481 (0x1e1), region = 44  ;;  %s861_s24 = sshll.u32 (!%p1563_p13), %s1382_s16, 4 }
  0x56   : > { %s344_s19 = scalar_lea.sflag (!%p1563_p13), [#allocation3], %s1382_s16  ;;  %s347_s25 = scalar_lea.vmem (!%p1563_p13), [#allocation2], %s861_s24 }
  0x5c   : > { %1131 = dma.done.wait (%p1564_p5), %s344_s19, 256  }
  0x5d   : > { %1133 = vsyncadd (%p1564_p5), %s344_s19, 4294967040  ;;  %s353_s0 = scalar_lea.sflag [#allocation6], %s1382_s16  ;;  %s356_s12 = scalar_lea.vmem [#allocation5], %s861_s24 }
  0x5e   : > { %1135 = dma.done.wait (%p1564_p5), %s353_s0, 256  }
  0x5f   : > { %1137 = vsyncadd (%p1564_p5), %s353_s0, 4294967040  ;;  %v1172_v0 = vmov 0.0   ;;  %v1173_v1 = vmov 0   ;;  %v409_v2 = vld [vmem:[%s347_s25 + $0x8] sm:$0xff]  ;;  %v408_v4 = vld [vmem:[%s347_s25] sm:$0xff]  ;;  %vm419_vm0 = vcmask 64512  }
  0x60   : > { %487 = vmatprep.mubr.f32.mxu0 %v1172_v0  ;;  %568 = vmatprep.mubr.f32.mxu1 %v1172_v0  ;;  %v411_v3 = vld [vmem:[%s356_s12 + $0x8] sm:$0xff]  ;;  %v410_v5 = vld [vmem:[%s356_s12] sm:$0xff]  ;;  %vm585_vm1 = vcmask 1043456   ;;  %s863_s13 = sshll.u32 %s1382_s16, 3  ;;  %s623_s25 = sand.u32 1, %s1253_s11  }
  0x61   : > { %961 = vset.pattern.permute.xlu0 %v1173_v1  ;;  %423 = vmatprep.subr.mxu0 %v409_v2  ;;  %v412_v6 = vld [vmem:[%s1534_s2] sm:$0xf]  ;;  %s396_s24 = scalar_lea.vmem [#allocation8], %s863_s13  ;;  %s1414_s19 = scalar_lea.vmem [#allocation7], %s863_s13 }
  0x62   : > { %504 = vmatprep.subr.mxu1 %v411_v3  ;;  %v494_v7 = vld [vmem:[%s1536_s4] sm:$0xf]  ;;  %424 = vmatpush1.msra.mxu0 %v408_v4  ;;  %s880_s0 = sshll.u32 %s1160_s30, 7  ;;  %s661_s26 = sshll.u32 %s396_s24, 4  ;;  %s1426_s26 = int_to_ptr.vmem [resolvable:$true] %s661_s26 }
  0x63   : > { %505 = vmatpush1.msra.mxu1 %v410_v5  ;;  %v413_v8 = vld [vmem:[%s1535_s3] sm:$0xf]  ;;  %866 = vmatmul.mubr.msk.f32.vlgmr.msra.gmra.mrb[0].mxu0 %vm419_vm0, %v412_v6  ;;  %s1424_s22 = scalar_lea.hbm %s1539_s7, %s880_s0  ;;  %s1431_s21 = scalar_lea.hbm %s1538_s6, %s880_s0 }
  0x64   : > { %867 = vmatmul.mubr.msk.f32.vlgmr.msra.gmra.mrb[0].mxu1 %vm419_vm0, %v494_v7  ;;  %416 = vperm.xlu0 %961, %v413_v8   ;;  %v495_v9 = vld [vmem:[%s1537_s5] sm:$0xf]  ;;  %s1433_s14 = scalar_lea.sflag [#allocation9], %s623_s25  ;;  %s1022_s11 = scalar_lea.vmem %s1426_s26, 128 }
  0x65   : > { %p1023_p8 = scmp.ne.s32.totalorder %s1426_s26, %s1022_s11  ;;  %p1565_p0 = scmp.ne.s32.totalorder %s1553_s18, 0 }
  0x66   : > { %s1174_s9 = smov [#allocation8]  }
  0x67   : > { %p1024_p7 = pnand %p1023_p8, %p1565_p0  ;;  %s1026_s13 = sshll.u32 %s1174_s9, 4  ;;  %s1027_s13 = int_to_ptr.vmem [resolvable:$false] %s1026_s13 }
  0x68   : > { %498 = vperm.xlu0 %961, %v495_v9   ;;  %p1029_p10 = scmp.lt.s32.totalorder %s1426_s26, %s1027_s13 }
  0x69   : > { %p1025_p4 = pneg %p1024_p7 }
  0xe3   : > { %v417_v10 = vpop.permute.xlu0 %416 }
  0xe7   : > { %v499_v11 = vpop.permute.xlu0 %498 }
 0x136   : > { %v489_v12 = vpop.f32.mrb[0].mxu0 }
 0x137   : > { %v570_v13 = vpop.f32.mrb[0].mxu1  ;;  %v490_v14 = vadd.f32 %v489_v12, %v417_v10  ;;  %v491_v16 = vpop.f32.mrb[1].mxu0 }
 0x138   : > { %v571_v15 = vadd.f32 %v570_v13, %v499_v11  ;;  %v572_v17 = vpop.f32.mrb[1].mxu1  ;;  %v492_v18 = vadd.f32 %v491_v16, %v417_v10 }
 0x139   : > { %v573_v19 = vadd.f32 %v572_v17, %v499_v11  ;;  %v586_v21 = vsel %vm585_vm1, %v490_v14, 0.0  ;;  %v593_v22 = vmul.f32 %v490_v14, %v490_v14 }
 0x13a   : > { %v602_v20 = vsel %vm585_vm1, %v571_v15, 0.0  ;;  %v609_v23 = vmul.f32 %v571_v15, %v571_v15  ;;  %v577_v24 = vcombine.low %v490_v14, %v492_v18  ;;  %v587_v27 = vsel %vm585_vm1, %v492_v18, 0.0 }
 0x13b   : > { %v582_v25 = vcombine.low %v571_v15, %v573_v19  ;;  %v603_v26 = vsel %vm585_vm1, %v573_v19, 0.0  ;;  %v588_v29 = vadd.f32 %v587_v27, %v586_v21  ;;  %v594_v30 = vmul.f32 %v492_v18, %v492_v18 }
 0x13c   : > { %v604_v28 = vadd.f32 %v603_v26, %v602_v20  ;;  %v595_v31 = vsel %vm585_vm1, %v593_v22, 0.0  ;;  %v610_v32 = vmul.f32 %v573_v19, %v573_v19  ;;  %v611_v33 = vsel %vm585_vm1, %v609_v23, 0.0  ;;  %579 = vst [vmem:[%s1414_s19] sm:$0xff] %v577_v24 }
 0x13d   : > { %584 = vst [vmem:[%s396_s24] sm:$0xff] %v582_v25  ;;  %589 = vadd.xlane.f32.xlu1 %v588_v29  ;;  %v596_v34 = vsel %vm585_vm1, %v594_v30, 0.0  ;;  %s1028_s24 = scalar_lea.vmem %s1027_s13, 256 }
 0x13e   : > { %605 = vadd.xlane.f32.xlu0 %v604_v28  ;;  %v597_v35 = vadd.f32 %v596_v34, %v595_v31  ;;  %v612_v36 = vsel %vm585_vm1, %v610_v32, 0.0  ;;  %p1030_p12 = scmp.lt.s32.totalorder %s1028_s24, %s1022_s11 }
 0x13f   : > { %v613_v37 = vadd.f32 %v612_v36, %v611_v33 }
 0x140   : > { %p1031_p1 = por %p1030_p12, %p1029_p10 }
 0x141   : > { %598 = vadd.xlane.f32.xlu1 %v597_v35 }
 0x142   : > { %p1032_p2 = pnand %p1031_p1, %p1025_p4 }
 0x145   : > { %614 = vadd.xlane.f32.xlu1 %v613_v37 }
 0x146   : > { %1035 = shalt.err (!%p1032_p2)
}
 0x147   : > { %s1036_s25 = scalar_lea.hbm %s1424_s22, 128  ;;  %s1040_s23 = scalar_lea.hbm %s1539_s7, 256 }
 0x148   : > { %p1037_p9 = scmp.ne.s32.totalorder %s1424_s22, %s1036_s25  ;;  %p1041_p6 = scmp.lt.u32.totalorder %s1424_s22, %s1539_s7 }
 0x149   : > { %p1042_p13 = scmp.lt.u32.totalorder %s1040_s23, %s1036_s25  ;;  %p1044_p8 = scmp.lt.u32.totalorder %s1036_s25, %s1424_s22 }
 0x14a   : > { %p1038_p11 = pnand %p1037_p9, %p1565_p0 }
 0x14b   : > { %p1043_p5 = por %p1042_p13, %p1041_p6 }
 0x14c   : > { %p1039_p3 = pneg %p1038_p11 }
 0x14d   : > { %p1045_p7 = por %p1044_p8, %p1043_p5 }
 0x14f   : > { %p1046_p4 = pnand %p1045_p7, %p1039_p3 }
 0x151   : > { %1049 = shalt.err (!%p1046_p4)
}
 0x152   : > { %887 = dma.vmem_to_hbm [thread:$0]  (%p1565_p0), %s1426_s26, 128, %s1424_s22, %s1433_s14  }
 0x153   : > { %s645_s11 = sshll.u32 %s1414_s19, 4  ;;  %s619_s9 = scalar_lea.sflag [#allocation4], %s1382_s16  ;;  %s646_s11 = int_to_ptr.vmem [resolvable:$true] %s645_s11 }
 0x154   : > { %s1050_s13 = scalar_lea.vmem %s646_s11, 128  ;;  %s1175_s24 = smov [#allocation7]  }
 0x155   : > { %p1051_p10 = scmp.ne.s32.totalorder %s646_s11, %s1050_s13  ;;  %s1054_s25 = sshll.u32 %s1175_s24, 4  ;;  %s1055_s25 = int_to_ptr.vmem [resolvable:$false] %s1054_s25 }
 0x156   : > { %s1056_s0 = scalar_lea.vmem %s1055_s25, 256  ;;  %p1057_p2 = scmp.lt.s32.totalorder %s646_s11, %s1055_s25 }
 0x157   : > { %p1052_p12 = pnand %p1051_p10, %p1565_p0  ;;  %p1058_p9 = scmp.lt.s32.totalorder %s1056_s0, %s1050_s13 }
 0x159   : > { %p1053_p1 = pneg %p1052_p12  ;;  %p1059_p11 = por %p1058_p9, %p1057_p2 }
 0x15b   : > { %p1060_p3 = pnand %p1059_p11, %p1053_p1 }
 0x15d   : > { %1063 = shalt.err (!%p1060_p3)
}
 0x15e   : > { %s1064_s19 = scalar_lea.hbm %s1431_s21, 128  ;;  %s1068_s12 = scalar_lea.hbm %s1538_s6, 256 }
 0x15f   : > { %p1065_p6 = scmp.ne.s32.totalorder %s1431_s21, %s1064_s19  ;;  %p1069_p8 = scmp.lt.u32.totalorder %s1431_s21, %s1538_s6 }
 0x160   : > { %p1070_p7 = scmp.lt.u32.totalorder %s1068_s12, %s1064_s19  ;;  %p1072_p10 = scmp.lt.u32.totalorder %s1064_s19, %s1431_s21 }
 0x161   : > { %p1066_p13 = pnand %p1065_p6, %p1565_p0 }
 0x162   : > { %p1071_p4 = por %p1070_p7, %p1069_p8 }
 0x163   : > { %p1067_p5 = pneg %p1066_p13 }
 0x164   : > { %p1073_p12 = por %p1072_p10, %p1071_p4 }
 0x166   : > { %p1074_p1 = pnand %p1073_p12, %p1067_p5 }
 0x168   : > { %1077 = shalt.err (!%p1074_p1)
}
 0x169   : > { %886 = dma.vmem_to_hbm [thread:$0]  (%p1565_p0), %s646_s11, 128, %s1431_s21, %s619_s9   ;;  %vm591_vm2 = vcmask 3072   ;;  %vm600_vm3 = vcmask 11272   ;;  %vm607_vm4 = vcmask 19472   ;;  %vm616_vm5 = vcmask 27672  }
 0x16a   : > { %s865_s15 = sshll.u32 %s1382_s16, 2  ;;  %s875_s24 = sshll.u32 %s1160_s30, 6 }
 0x16b   : > { %s403_s13 = scalar_lea.vmem [#allocation10], %s865_s15  ;;  %s1481_s22 = scalar_lea.hbm %s1540_s8, %s875_s24 }
 0x16c   : > { %s675_s25 = sshll.u32 %s403_s13, 4  ;;  %s1176_s30 = smov [#allocation10]   ;;  %s1483_s25 = int_to_ptr.vmem [resolvable:$true] %s675_s25 }
 0x16d   : > { %s1078_s16 = scalar_lea.vmem %s1483_s25, 64  ;;  %s1082_s21 = sshll.u32 %s1176_s30, 4  ;;  %s1083_s21 = int_to_ptr.vmem [resolvable:$false] %s1082_s21 }
 0x16e   : > { %p1079_p2 = scmp.ne.s32.totalorder %s1483_s25, %s1078_s16  ;;  %s1084_s11 = scalar_lea.vmem %s1083_s21, 128 }
 0x16f   : > { %p1085_p3 = scmp.lt.s32.totalorder %s1483_s25, %s1083_s21  ;;  %p1086_p6 = scmp.lt.s32.totalorder %s1084_s11, %s1078_s16 }
 0x170   : > { %p1080_p9 = pnand %p1079_p2, %p1565_p0 }
 0x171   : > { %p1087_p13 = por %p1086_p6, %p1085_p3 }
 0x172   : > { %p1081_p11 = pneg %p1080_p9 }
 0x174   : > { %p1088_p5 = pnand %p1087_p13, %p1081_p11 }
 0x1ca   : > { %v590_v38 = vpop.xlane.xlu1 %589 }
 0x1cb   : > { %592 = vst.msk [vmem:[%s403_s13] sm:$0xf] %vm591_vm2, %v590_v38  ;;  %v606_v40 = vpop.xlane.xlu0 %605 }
 0x1ce   : > { %v599_v39 = vpop.xlane.xlu1 %598 }
 0x1cf   : > { %601 = vst.msk [vmem:[%s403_s13] sm:$0xf] %vm600_vm3, %v599_v39 }
 0x1d0   : > { %608 = vst.msk [vmem:[%s403_s13] sm:$0xf] %vm607_vm4, %v606_v40 }
 0x1d2   : > { %v615_v41 = vpop.xlane.xlu1 %614 }
 0x1d3   : > { %617 = vst.msk [vmem:[%s403_s13] sm:$0xf] %vm616_vm5, %v615_v41 }
 0x1d4   : > { %1091 = shalt.err (!%p1088_p5)
}
 0x1d5   : > { %s1092_s9 = scalar_lea.hbm %s1481_s22, 64  ;;  %s1096_s23 = scalar_lea.hbm %s1540_s8, 128 }
 0x1d6   : > { %p1093_p8 = scmp.ne.s32.totalorder %s1481_s22, %s1092_s9  ;;  %p1097_p10 = scmp.lt.u32.totalorder %s1481_s22, %s1540_s8 }
 0x1d7   : > { %p1098_p12 = scmp.lt.u32.totalorder %s1096_s23, %s1092_s9  ;;  %p1100_p2 = scmp.lt.u32.totalorder %s1092_s9, %s1481_s22 }
 0x1d8   : > { %p1094_p7 = pnand %p1093_p8, %p1565_p0 }
 0x1d9   : > { %p1099_p1 = por %p1098_p12, %p1097_p10 }
 0x1da   : > { %p1095_p4 = pneg %p1094_p7 }
 0x1db   : > { %p1101_p9 = por %p1100_p2, %p1099_p1 }
 0x1dd   : > { %p1102_p11 = pnand %p1101_p9, %p1095_p4 }
 0x1df   : > { %1105 = shalt.err (!%p1102_p11)
}
 0x1e0   : > { %888 = dma.vmem_to_hbm [thread:$0]  (%p1565_p0), %s1483_s25, 64, %s1481_s22, %s1433_s14  }
 0x1e1 PF: > { %s687_s13 = sand.u32 1, %s1148_s27   ;;  %p1566_p3 = scmp.ne.s32.totalorder %s1555_s20, 0 }
 0x1e2   : > { %p1567_p6 = scmp.ge.s32.totalorder %s1168_s10, 2  ;;  %s688_s24 = scalar_lea.sflag [#allocation4], %s687_s13 }
 0x1e4   : > { %p900_p13 = pnand %p1567_p6, %p1566_p3 }
 0x1e6   : > { %1139 = dma.done.wait (!%p900_p13), %s688_s24, 128  }
 0x1e7   : > { %1141 = vsyncadd (!%p900_p13), %s688_s24, 4294967168  ;;  %s1568_s0 = sadd.s32 4294967294, %s1168_s10  }
 0x1e8   : > { %s696_s19 = sand.u32 1, %s1568_s0  }
 0x1e9   : > { %s697_s16 = scalar_lea.sflag [#allocation9], %s696_s19 }
 0x1ea   : > { %1143 = dma.done.wait (!%p900_p13), %s697_s16, 192  }
 0x1eb   : > { %1145 = vsyncadd (!%p900_p13), %s697_s16, 4294967104  ;;  %s31_s10 = sadd.s32 1, %s1168_s10   ;;  %s1569_s18 = sld [smem:[#allocation17_spill]] }
 0x1ec   : > { %p28_p0 = scmp.ge.s32.totalorder %s31_s10, 4   ;;  %s1570_s30 = sld [smem:[#allocation15_spill]] }
 0x1ed   : > { %s1571_s9 = sld [smem:[#allocation16_spill]]  ;;  %s1572_s27 = smov %s1152_s28 }
 0x1ee   : > { %s1573_s28 = smov %s1156_s29  ;;  %30 = sbr.rel (!%p28_p0) target bundleno = 12 (0xc), region = 134 }
 0x1f1   : > { %s1574_s29 = smov %s1569_s18 }
 0x1f5   :  { %711 = vsyncpa [#allocation3], 1 }
 0x1f6   :  { %713 = vsyncpa [#allocation3 + $0x1], 1 }
 0x1f7   :  { %714 = vsyncpa [#allocation6], 1 }
 0x1f8   :  { %716 = vsyncpa [#allocation6 + $0x1], 1 }
 0x1f9   :  { %717 = vsyncpa [#allocation4], 1 }
 0x1fa   :  { %719 = vsyncpa [#allocation4 + $0x1], 1 }
 0x1fb   :  { %720 = vsyncpa [#allocation9], 1 }
 0x1fc   :  { %722 = vsyncpa [#allocation9 + $0x1], 1 }

</bundles_post_ra>
